<compile_context>
chip_gen: v7x
topology: tpu7x:2x2x1
jax: 0.10.0
libtpu: 0.0.40
codegen_flags: <defaults>
</compile_context>

<pallas_src>
import jax
import jax.numpy as jnp
from jax.experimental import pallas as pl
from jax.experimental.pallas import tpu as pltpu

EPS = 1e-5


def _cdiv(a, b):
    return -(-a // b)


def _round_up(a, m):
    return _cdiv(a, m) * m


def _pick_tile_s(n, c, hw, vmem_budget=28 * 1024 * 1024, max_tile=8192):
    """Pick the spatial (lane) tile width from an explicit VMEM budget."""
    hw_ceil = _round_up(hw, 128)
    # Two (C, C) f32 weight blocks, double-buffered, lane dim padded to >=128.
    weight_bytes = 2 * 2 * c * max(c, 128) * 4
    avail = max(vmem_budget - weight_bytes, 4 * 1024 * 1024)
    # x + out blocks: 2 specs * 2 buffers * C(sublane-padded) * tile * 4 B.
    tile = avail // (16 * max(c, 8))
    tile = max(128, min(tile, max_tile, hw_ceil))
    tile = (tile // 128) * 128
    # Split the (padded) spatial extent evenly to minimize padding waste.
    tile = _round_up(_cdiv(hw_ceil, _cdiv(hw_ceil, tile)), 128)
    # Keep >= 2 grid steps so both v7x TensorCores get work.
    if n * _cdiv(hw_ceil, tile) < 2 and hw_ceil > 128:
        tile = _round_up(_cdiv(hw_ceil, 2), 128)
    return tile


def residual1x1_kernel(x_ref, w1_ref, w2_ref, p_ref, o_ref):
    x = x_ref[...]                                   # (C, TS) f32, spatial on lanes
    wdt = w1_ref.dtype                               # f32 (or bf16 for large C)
    b1 = p_ref[:, 0:1]                               # (C, 1) per-channel bias
    b2 = p_ref[:, 1:2]
    gamma = p_ref[:, 2:3]
    beta = p_ref[:, 3:4]

    h = jnp.maximum(x, 0.0)                          # relu(x)
    h = jnp.dot(w1_ref[...], h.astype(wdt),
                preferred_element_type=jnp.float32) + b1   # conv1 (1x1)
    h = jnp.maximum(h, 0.0)                          # relu
    h = jnp.dot(w2_ref[...], h.astype(wdt),
                preferred_element_type=jnp.float32) + b2   # conv2 (1x1)

    # ChannelNorm: per-pixel mean / biased variance over the channel axis
    # (sublane axis), eps inside the rsqrt, then affine.
    mean = jnp.mean(h, axis=0, keepdims=True)        # (1, TS)
    var = jnp.mean((h - mean) ** 2, axis=0, keepdims=True)
    hn = (h - mean) * jax.lax.rsqrt(var + EPS)

    o_ref[...] = x + hn * gamma + beta               # residual add


def residual1x1(x_nchw, params, *, tile_s=None, matmul_dtype=None,
                vmem_limit_bytes=None):
    """x_nchw: (N, C, H, W) float32.  params: dict from init_params."""
    x_nchw = x_nchw.astype(jnp.float32)
    N, C, H, W = x_nchw.shape
    hw = H * W

    if tile_s is None:
        tile_s = _pick_tile_s(N, C, hw)
    # bf16 matmul operands (f32 accumulate) only pay off once compute-bound.
    if matmul_dtype is None:
        matmul_dtype = jnp.bfloat16 if C >= 256 else jnp.float32

    # Free reshape — no transpose, no extra HBM pass.
    x3 = x_nchw.reshape(N, C, hw)
    hw_p = _round_up(hw, tile_s)
    if hw_p != hw:
        x3 = jnp.pad(x3, ((0, 0), (0, 0), (0, hw_p - hw)))

    w1 = params["w1"].astype(matmul_dtype)           # (C_out, C_in)
    w2 = params["w2"].astype(matmul_dtype)
    # Pack the four per-channel vectors into one (C, 4) operand.
    packed = jnp.stack(
        [params["b1"], params["b2"], params["gamma"], params["beta"]],
        axis=1).astype(jnp.float32)

    grid = (N, hw_p // tile_s)

    if vmem_limit_bytes is None:
        est = (2 * 2 * max(C, 8) * tile_s * 4            # x + out double buffers
               + 2 * 2 * C * max(C, 128) * 4             # w1 + w2 double buffers
               + 2 * max(C, 8) * 128 * 4)                # packed params
        # Raise above v5e's 16 MiB scoped default; stay under v7x's 64 MiB.
        vmem_limit_bytes = min(max(32 * 1024 * 1024, int(est * 1.5)),
                               48 * 1024 * 1024)

    x_spec = pl.BlockSpec((None, C, tile_s), lambda n, s: (n, 0, s))
    w_spec = pl.BlockSpec((C, C), lambda n, s: (0, 0))       # grid-invariant
    p_spec = pl.BlockSpec((C, 4), lambda n, s: (0, 0))       # grid-invariant
    out_spec = pl.BlockSpec((None, C, tile_s), lambda n, s: (n, 0, s))

    out = pl.pallas_call(
        residual1x1_kernel,
        out_shape=jax.ShapeDtypeStruct((N, C, hw_p), jnp.float32),
        grid_spec=pltpu.PrefetchScalarGridSpec(
            num_scalar_prefetch=0,
            grid=grid,
            in_specs=[x_spec, w_spec, w_spec, p_spec],
            out_specs=out_spec,
        ),
        compiler_params=pltpu.CompilerParams(
            dimension_semantics=("parallel", "parallel"),
            vmem_limit_bytes=vmem_limit_bytes),
    )(x3, w1, w2, packed)

    if hw_p != hw:
        out = out[:, :, :hw]
    return out.reshape(N, C, H, W)


def init_params(key, num_channels):
    """Synthetic init matching nn.Conv2d(C, C, 1) + ChannelNorm(C) shapes."""
    k1, k2, k3, k4 = jax.random.split(key, 4)
    bound = 1.0 / jnp.sqrt(num_channels)  # PyTorch conv default init bound
    # PyTorch conv weight is (C_out, C_in, 1, 1); stored squeezed as
    # (C_out, C_in) so the kernel computes W @ x directly (no transpose).
    w1 = jax.random.uniform(k1, (num_channels, num_channels), jnp.float32,
                            -bound, bound)
    b1 = jax.random.uniform(k2, (num_channels,), jnp.float32, -bound, bound)
    w2 = jax.random.uniform(k3, (num_channels, num_channels), jnp.float32,
                            -bound, bound)
    b2 = jax.random.uniform(k4, (num_channels,), jnp.float32, -bound, bound)
    gamma = jnp.ones((num_channels,), jnp.float32)
    beta = jnp.zeros((num_channels,), jnp.float32)
    return {"w1": w1, "b1": b1, "w2": w2, "b2": b2, "gamma": gamma, "beta": beta}


def residual1x1_ref(x_nchw, params):
    """Pure-JAX reference reproducing the PyTorch semantics (NCHW)."""
    N, C, H, W = x_nchw.shape
    x = x_nchw.reshape(N, C, H * W)
    h = jnp.maximum(x, 0.0)
    h = jnp.einsum("oc,ncs->nos", params["w1"], h) + params["b1"][None, :, None]
    h = jnp.maximum(h, 0.0)
    h = jnp.einsum("oc,ncs->nos", params["w2"], h) + params["b2"][None, :, None]
    mean = jnp.mean(h, axis=1, keepdims=True)
    var = jnp.mean((h - mean) ** 2, axis=1, keepdims=True)
    hn = (h - mean) * jax.lax.rsqrt(var + EPS)
    out = x + hn * params["gamma"][None, :, None] + params["beta"][None, :, None]
    return out.reshape(N, C, H, W)


if __name__ == "__main__":
    key = jax.random.PRNGKey(0)
    kx, kp = jax.random.split(key)

    N, C, H, W = 2, 4, 16, 16
    x = jax.random.normal(kx, (N, C, H, W), jnp.float32)
    params = init_params(kp, C)

    out = residual1x1(x, params)
    out = jax.block_until_ready(out)

    ref = residual1x1_ref(x, params)
    assert out.shape == (N, C, H, W)
    assert jnp.allclose(out, ref, atol=1e-5, rtol=1e-5)

    print("KERNEL_OK")
</pallas_src>

<mosaic_0001>
module attributes {stable_mosaic.version = 11 : i64} {
  func.func @residual1x1_kernel(%arg0: i32, %arg1: i32, %arg2: memref<1x4x256xf32, #tpu.memory_space<vmem>>, %arg3: memref<4x4xf32, #tpu.memory_space<vmem>>, %arg4: memref<4x4xf32, #tpu.memory_space<vmem>>, %arg5: memref<4x4xf32, #tpu.memory_space<vmem>>, %arg6: memref<1x4x256xf32, #tpu.memory_space<vmem>>) attributes {dimension_semantics = [#tpu.dimension_semantics<parallel>, #tpu.dimension_semantics<parallel>], iteration_bounds = array<i64: 2, 1>, scalar_prefetch = 0 : i64, scratch_operands = 0 : i64, tpu.core_type = #tpu.core_type<tc>, window_params = [{transform_indices = @transform_0, window_bounds = array<i64: 1, 4, 256>}, {pipeline_mode = #tpu.pipeline_mode<synchronous>, transform_indices = @transform_1, window_bounds = array<i64: 4, 4>}, {pipeline_mode = #tpu.pipeline_mode<synchronous>, transform_indices = @transform_2, window_bounds = array<i64: 4, 4>}, {pipeline_mode = #tpu.pipeline_mode<synchronous>, transform_indices = @transform_3, window_bounds = array<i64: 4, 4>}, {transform_indices = @transform_4, window_bounds = array<i64: 1, 4, 256>}]} {
    %c0 = arith.constant 0 : index
    %c0_0 = arith.constant 0 : index
    %c0_1 = arith.constant 0 : index
    %0 = vector.load %arg2[%c0, %c0_0, %c0_1] : memref<1x4x256xf32, #tpu.memory_space<vmem>>, vector<1x4x256xf32>
    %1 = vector.shape_cast %0 : vector<1x4x256xf32> to vector<4x256xf32>
    %c0_2 = arith.constant 0 : index
    %c0_3 = arith.constant 0 : index
    %2 = vector.load %arg5[%c0_2, %c0_3] : memref<4x4xf32, #tpu.memory_space<vmem>>, vector<4x1xf32>
    %c0_4 = arith.constant 0 : index
    %c1 = arith.constant 1 : index
    %3 = vector.load %arg5[%c0_4, %c1] : memref<4x4xf32, #tpu.memory_space<vmem>>, vector<4x1xf32>
    %c0_5 = arith.constant 0 : index
    %c2 = arith.constant 2 : index
    %4 = vector.load %arg5[%c0_5, %c2] : memref<4x4xf32, #tpu.memory_space<vmem>>, vector<4x1xf32>
    %c0_6 = arith.constant 0 : index
    %c3 = arith.constant 3 : index
    %5 = vector.load %arg5[%c0_6, %c3] : memref<4x4xf32, #tpu.memory_space<vmem>>, vector<4x1xf32>
    %cst = arith.constant 0.000000e+00 : f32
    %6 = vector.broadcast %cst : f32 to vector<4x256xf32>
    %7 = arith.maximumf %1, %6 : vector<4x256xf32>
    %c0_7 = arith.constant 0 : index
    %c0_8 = arith.constant 0 : index
    %8 = vector.load %arg3[%c0_7, %c0_8] : memref<4x4xf32, #tpu.memory_space<vmem>>, vector<4x4xf32>
    %cst_9 = arith.constant dense<0.000000e+00> : vector<4x256xf32>
    %9 = tpu.matmul %8, %7, %cst_9 {dimension_numbers = #tpu.dot_dimension_numbers<[1], [0], [0], [1], [0, 0, 1, 1], [], []>} : vector<4x4xf32>, vector<4x256xf32>, vector<4x256xf32> -> vector<4x256xf32>
    %10 = vector.broadcast %2 : vector<4x1xf32> to vector<4x256xf32>
    %11 = arith.addf %9, %10 : vector<4x256xf32>
    %cst_10 = arith.constant 0.000000e+00 : f32
    %12 = vector.broadcast %cst_10 : f32 to vector<4x256xf32>
    %13 = arith.maximumf %11, %12 : vector<4x256xf32>
    %c0_11 = arith.constant 0 : index
    %c0_12 = arith.constant 0 : index
    %14 = vector.load %arg4[%c0_11, %c0_12] : memref<4x4xf32, #tpu.memory_space<vmem>>, vector<4x4xf32>
    %cst_13 = arith.constant dense<0.000000e+00> : vector<4x256xf32>
    %15 = tpu.matmul %14, %13, %cst_13 {dimension_numbers = #tpu.dot_dimension_numbers<[1], [0], [0], [1], [0, 0, 1, 1], [], []>} : vector<4x4xf32>, vector<4x256xf32>, vector<4x256xf32> -> vector<4x256xf32>
    %16 = vector.broadcast %3 : vector<4x1xf32> to vector<4x256xf32>
    %17 = arith.addf %15, %16 : vector<4x256xf32>
    %cst_14 = arith.constant dense<0.000000e+00> : vector<256xf32>
    %18 = vector.multi_reduction <add>, %17, %cst_14 [0] : vector<4x256xf32> to vector<256xf32>
    %19 = vector.shape_cast %18 : vector<256xf32> to vector<1x256xf32>
    %cst_15 = arith.constant 4.000000e+00 : f32
    %20 = vector.broadcast %cst_15 : f32 to vector<1x256xf32>
    %21 = arith.divf %19, %20 : vector<1x256xf32>
    %22 = vector.broadcast %21 : vector<1x256xf32> to vector<4x256xf32>
    %23 = arith.subf %17, %22 : vector<4x256xf32>
    %24 = arith.mulf %23, %23 : vector<4x256xf32>
    %cst_16 = arith.constant dense<0.000000e+00> : vector<256xf32>
    %25 = vector.multi_reduction <add>, %24, %cst_16 [0] : vector<4x256xf32> to vector<256xf32>
    %26 = vector.shape_cast %25 : vector<256xf32> to vector<1x256xf32>
    %cst_17 = arith.constant 4.000000e+00 : f32
    %27 = vector.broadcast %cst_17 : f32 to vector<1x256xf32>
    %28 = arith.divf %26, %27 : vector<1x256xf32>
    %29 = vector.broadcast %21 : vector<1x256xf32> to vector<4x256xf32>
    %30 = arith.subf %17, %29 : vector<4x256xf32>
    %cst_18 = arith.constant 9.99999974E-6 : f32
    %31 = vector.broadcast %cst_18 : f32 to vector<1x256xf32>
    %32 = arith.addf %28, %31 : vector<1x256xf32>
    %33 = math.rsqrt %32 : vector<1x256xf32>
    %34 = vector.broadcast %33 : vector<1x256xf32> to vector<4x256xf32>
    %35 = arith.mulf %30, %34 : vector<4x256xf32>
    %36 = vector.broadcast %4 : vector<4x1xf32> to vector<4x256xf32>
    %37 = arith.mulf %35, %36 : vector<4x256xf32>
    %38 = arith.addf %1, %37 : vector<4x256xf32>
    %39 = vector.broadcast %5 : vector<4x1xf32> to vector<4x256xf32>
    %40 = arith.addf %38, %39 : vector<4x256xf32>
    %c0_19 = arith.constant 0 : index
    %c0_20 = arith.constant 0 : index
    %c0_21 = arith.constant 0 : index
    %41 = vector.load %arg6[%c0_19, %c0_20, %c0_21] : memref<1x4x256xf32, #tpu.memory_space<vmem>>, vector<1x4x256xf32>
    %42 = vector.shape_cast %41 : vector<1x4x256xf32> to vector<4x256xf32>
    %43 = vector.shape_cast %40 : vector<4x256xf32> to vector<1x4x256xf32>
    tpu.vector_store %arg6[%c0_19, %c0_20, %c0_21], %43 {strides = array<i32>} : memref<1x4x256xf32, #tpu.memory_space<vmem>>, vector<1x4x256xf32>,
    return
  }
  func.func @transform_0(%arg0: i32, %arg1: i32) -> (i32, i32, i32) {
    %c0_i32 = arith.constant 0 : i32
    %c0_i32_0 = arith.constant 0 : i32
    return %arg0, %c0_i32, %arg1 : i32, i32, i32
  }
  func.func @transform_1(%arg0: i32, %arg1: i32) -> (i32, i32) {
    %c0_i32 = arith.constant 0 : i32
    %c0_i32_0 = arith.constant 0 : i32
    %c0_i32_1 = arith.constant 0 : i32
    return %c0_i32, %c0_i32_0 : i32, i32
  }
  func.func @transform_2(%arg0: i32, %arg1: i32) -> (i32, i32) {
    %c0_i32 = arith.constant 0 : i32
    %c0_i32_0 = arith.constant 0 : i32
    %c0_i32_1 = arith.constant 0 : i32
    return %c0_i32, %c0_i32_0 : i32, i32
  }
  func.func @transform_3(%arg0: i32, %arg1: i32) -> (i32, i32) {
    %c0_i32 = arith.constant 0 : i32
    %c0_i32_0 = arith.constant 0 : i32
    %c0_i32_1 = arith.constant 0 : i32
    return %c0_i32, %c0_i32_0 : i32, i32
  }
  func.func @transform_4(%arg0: i32, %arg1: i32) -> (i32, i32, i32) {
    %c0_i32 = arith.constant 0 : i32
    %c0_i32_0 = arith.constant 0 : i32
    return %arg0, %c0_i32, %arg1 : i32, i32, i32
  }
}

</mosaic_0001>

<bundles_post_ra>
// kernel: tpu_custom_call.1
= control target key start
LH: loop header
LB: loop body
LE: loop exit
PB: predicated region body
PF: predicated region fallthrough
CT: control target
= control target key end

     0   :  { %9 = vsyncpa [#allocation3], 0  ;;  %s1136_s0 = inlined_call_operand.hbm [shape: f32[2,4,256], index: 0, kind: input, shape index: {}]   ;;  %s1137_s1 = inlined_call_operand.hbm [shape: f32[4,4], index: 1, kind: input, shape index: {}]   ;;  %s1138_s2 = inlined_call_operand.vmem [shape: f32[4,4], index: 2, kind: input, shape index: {}]   ;;  %s1139_s3 = inlined_call_operand.vmem [shape: f32[4,4], index: 3, kind: input, shape index: {}]   ;;  %s1140_s4 = inlined_call_operand.hbm [shape: f32[2,4,256], index: 4, kind: output, shape index: {}]  }
   0x1   :  { %11 = vsyncpa [#allocation3 + $0x1], 0 }
   0x2   :  { %12 = vsyncpa [#allocation6], 0 }
   0x3   :  { %13 = vsyncpa [#allocation4], 0 }
   0x4   :  { %15 = vsyncpa [#allocation4 + $0x1], 0  ;;  %s896_s15 = smov 0   ;;  %s898_s16 = smov 0  }
   0x5   :  { %s900_s17 = smov 0   ;;  %s902_s18 = smov 0  }
   0x6   :  { %s904_s19 = smov 0   ;;  %s906_s20 = smov 0  }
   0x7 LB: > { %s603_s21 = sadd.s32 4294967295, %s860_s20   ;;  %s604_s22 = sadd.s32 4294967294, %s860_s20   ;;  %s860_s20 = sphi %s906_s20, %s21_s20   ;;  %s856_s19 = sphi %s904_s19, %s1165_s19   ;;  %s852_s18 = sphi %s902_s18, %s1164_s18   ;;  %s848_s17 = sphi %s900_s17, %s1163_s17   ;;  %s844_s16 = sphi %s898_s16, %s1162_s16   ;;  %s840_s15 = sphi %s896_s15, %s1161_s15  }
   0x8   : > { %p55_p0 = scmp.ne.s32.totalorder %s844_s16, %s840_s15  ;;  %p930_p1 = scmp.eq.s32.totalorder %s603_s21, 0 }
   0x9   : > { %p934_p2 = scmp.eq.s32.totalorder %s603_s21, 1  ;;  %p150_p3 = scmp.eq.s32.totalorder %s604_s22, 1 }
   0xa   : > { %s1145_s23 = scalar_select %p930_p1, 1, 0 }
   0xb   : > { %s1146_s24 = scalar_select %p934_p2, 1, 0 }
   0xc   : > { %p940_p4 = por %p930_p1, %p55_p0  ;;  %p605_p5 = scmp.ge.s32.totalorder %s860_s20, 1 }
   0xd   : > { %p945_p6 = por %p150_p3, %p55_p0  ;;  %p157_p7 = scmp.lt.s32.totalorder %s860_s20, 3 }
   0xe   : > { %s1147_s25 = scalar_select %p940_p4, 1, 0 }
   0xf   : > { %s1148_s26 = scalar_select %p945_p6, 1, 0 }
  0x10   : > { %p950_p8 = pnand %p605_p5, %p157_p7  ;;  %s862_s28 = smov [#allocation5]  }
  0x11   : > { %s170_s29 = sshll.u32 %s862_s28, 4  ;;  %s33_s5 = sadd.s32 1, %s856_s19  ;;  %s171_s29 = int_to_ptr.vmem [resolvable:$true] %s170_s29 }
  0x12   : > { %s1149_s27 = scalar_select %p950_p8, 1, 0 }
  0x13   : > { %p636_p10 = pneg %p950_p8  ;;  %s42_s6 = sadd.s32 1, %s848_s17 }
  0x14   : > { %p965_p12 = scmp.ge.s32.totalorder %s33_s5, 2  ;;  %s716_s10 = scalar_lea.hbm %s1137_s1, 64 }
  0x15   : > { %p959_p11 = pnand %p636_p10, %p930_p1  ;;  %p717_p13 = scmp.ne.s32.totalorder %s1137_s1, %s716_s10 }
  0x16   : > { %s1151_s7 = scalar_select %p965_p12, 1, 0 }
  0x17   : > { %p718_p0 = pneg %p959_p11  ;;  %p723_p7 = scmp.lt.u32.totalorder %s716_s10, %s1137_s1 }
  0x19   : > { %p719_p3 = pnand %p718_p0, %p717_p13 }
  0x1b   : > { %p720_p5 = pneg %p719_p3 }
  0x1d   : > { %p725_p10 = pnand %p723_p7, %p720_p5 }
  0x1f   : > { %728 = shalt.err (!%p725_p10)
}
  0x20   : > { %s729_s21 = scalar_lea.vmem %s171_s29, 64  ;;  %p737_p4 = scmp.lt.s32.totalorder %s171_s29, %s171_s29 }
  0x21   : > { %p730_p9 = scmp.ne.s32.totalorder %s171_s29, %s729_s21  ;;  %p738_p8 = scmp.lt.s32.totalorder %s729_s21, %s729_s21 }
  0x23   : > { %p732_p6 = pnand %p730_p9, %p718_p0  ;;  %p739_p2 = por %p738_p8, %p737_p4 }
  0x25   : > { %p733_p1 = pneg %p732_p6 }
  0x27   : > { %p740_p12 = pnand %p739_p2, %p733_p1 }
  0x29   : > { %743 = shalt.err (!%p740_p12)
}
  0x2a   : > { %639 = dma.hbm_to_vmem [thread:$0]  (!%p959_p11), %s1137_s1, 64, %s171_s29, [#allocation6]  }
  0x2b   : > { %p1152_p4 = scmp.ne.s32.totalorder %s1151_s7, 0  ;;  %p49_p1 = scmp.ne.s32.totalorder %s848_s17, %s844_s16 }
  0x2c   : > { %p50_p2 = scmp.eq.s32.totalorder %s860_s20, 0  ;;  %p649_p6 = scmp.lt.s32.totalorder %s860_s20, 2 }
  0x2d   : > { %s1167_s5 = smov (%p1152_p4, %s33_s5), 0  ;;  %p1153_p12 = scmp.ne.s32.totalorder %s1146_s24, 0 }
  0x2e   : > { %s37_s30 = ssub.s32 %s856_s19, %s1167_s5  ;;  %p51_p9 = por %p50_p2, %p49_p1 }
  0x2f   : > { %p40_p8 = scmp.eq.s32.totalorder %s37_s30, 0  ;;  %p997_p13 = por %p1153_p12, %p49_p1 }
  0x30   : > { %s187_s9 = sand.u32 1, %s848_s17   ;;  %s626_s7 = sshll.u32 %s856_s19, 7 }
  0x31   : > { %s1005_s10 = scalar_select %p40_p8, %s848_s17, %s42_s6  }
  0x32   : > { %s608_s29 = sshll.u32 %s187_s9, 3  ;;  %s1011_s13 = scalar_lea.hbm %s1136_s0, %s626_s7 }
  0x33   : > { %s191_s24 = scalar_lea.vmem [#allocation2], %s608_s29  ;;  %p1015_p11 = pnand %p649_p6, %p51_p9 }
  0x34   : > { %s201_s14 = sshll.u32 %s191_s24, 4  ;;  %s188_s6 = scalar_lea.sflag [#allocation3], %s187_s9  ;;  %s1013_s14 = int_to_ptr.vmem [resolvable:$true] %s201_s14 }
  0x35   : > { %s744_s22 = scalar_lea.hbm %s1011_s13, 128  ;;  %p746_p3 = pneg %p1015_p11 }
  0x36   : > { %p745_p0 = scmp.ne.s32.totalorder %s1011_s13, %s744_s22  ;;  %s749_s29 = scalar_lea.hbm %s1136_s0, 256 }
  0x37   : > { %p750_p10 = scmp.lt.u32.totalorder %s1011_s13, %s1136_s0  ;;  %p751_p4 = scmp.lt.u32.totalorder %s749_s29, %s744_s22 }
  0x38   : > { %p747_p5 = pnand %p746_p3, %p745_p0  ;;  %p753_p2 = scmp.lt.u32.totalorder %s744_s22, %s1011_s13 }
  0x39   : > { %p752_p1 = por %p751_p4, %p750_p10 }
  0x3a   : > { %p748_p7 = pneg %p747_p5 }
  0x3b   : > { %p754_p6 = por %p753_p2, %p752_p1 }
  0x3d   : > { %p755_p8 = pnand %p754_p6, %p748_p7 }
  0x3f   : > { %758 = shalt.err (!%p755_p8)
}
  0x40   : > { %s759_s9 = scalar_lea.vmem %s1013_s14, 128  ;;  %s863_s12 = smov [#allocation2]  }
  0x41   : > { %p760_p9 = scmp.ne.s32.totalorder %s1013_s14, %s759_s9  ;;  %s764_s24 = sshll.u32 %s863_s12, 4  ;;  %s765_s24 = int_to_ptr.vmem [resolvable:$false] %s764_s24 }
  0x42   : > { %s766_s28 = scalar_lea.vmem %s765_s24, 256  ;;  %p767_p5 = scmp.lt.s32.totalorder %s1013_s14, %s765_s24 }
  0x43   : > { %p762_p12 = pnand %p760_p9, %p746_p3  ;;  %p768_p10 = scmp.lt.s32.totalorder %s766_s28, %s759_s9 }
  0x45   : > { %p763_p0 = pneg %p762_p12  ;;  %p769_p4 = por %p768_p10, %p767_p5 }
  0x47   : > { %p770_p1 = pnand %p769_p4, %p763_p0 }
  0x49   : > { %773 = shalt.err (!%p770_p1)
}
  0x4a   : > { %643 = dma.hbm_to_vmem [thread:$0]  (!%p1015_p11), %s1011_s13, 128, %s1013_s14, %s188_s6  }
  0x4b   : > { %p1156_p7 = scmp.ne.s32.totalorder %s1149_s27, 0 }
  0x4c   : > { %s1047_s22 = sand.u32 (!%p1156_p7), 1, %s844_s16   ;;  %p1157_p3 = scmp.ne.s32.totalorder (!%p1156_p7), %s1147_s25, 0 }
  0x4d   : > { %210 = sbr.rel (%p1156_p7) target bundleno = 600 (0x258), region = 36  ;;  %s612_s30 = sshll.u32 (!%p1156_p7), %s1047_s22, 3 }
  0x4e   : > { %s213_s29 = scalar_lea.sflag (!%p1156_p7), [#allocation3], %s1047_s22  ;;  %s216_s7 = scalar_lea.vmem (!%p1156_p7), [#allocation2], %s612_s30 }
  0x54   : > { %827 = dma.done.wait (%p1157_p3), %s213_s29, 128  }
  0x55   : > { %829 = vsyncadd (%p1157_p3), %s213_s29, 4294967168  ;;  %p1158_p11 = scmp.ne.s32.totalorder %s1145_s23, 0 }
  0x57   : > { %831 = dma.done.wait (%p1158_p11), [#allocation6], 64  }
  0x58   : > { %833 = vsyncadd (%p1158_p11), [#allocation6], 4294967232  ;;  %v864_v0 = vmov 0.0   ;;  %v865_v1 = vmov 0   ;;  %v1061_v2 = vld [vmem:[%s216_s7] sm:$0xff]  ;;  %vm262_vm0 = vcmask 1043456   ;;  %v485_v63 = vlaneseq }
  0x59   : > { %331 = vmatprep.mubr.f32.mxu0 %v864_v0  ;;  %707 = vset.pattern.permute.xlu0 %v865_v1  ;;  %v248_v3 = vld [vmem:[%s1139_s3] sm:$0xf]  ;;  %v249_v4 = vmax.f32 %v1061_v2, 0.0  ;;  %v250_v6 = vld [vmem:[#allocation5] sm:$0xf]  ;;  %vm258_vm1 = vcmask 31744  }
  0x5a   : > { %418 = vmatprep.mubr.f32.mxu1 %v864_v0  ;;  %253 = vperm.xlu0 %707, %v248_v3   ;;  %v866_v7 = vmov 1   ;;  %v867_v8 = vmov 2   ;;  %v868_v9 = vmov 3   ;;  %v340_v17 = vld [vmem:[%s1138_s2] sm:$0xf]  ;;  %s627_s14 = sshll.u32 %s852_s18, 7 }
  0x5b   : > { %v257_v5 = vcombine.high %v249_v4, %v249_v4  ;;  %709 = vset.pattern.permute.xlu1 %v867_v8  ;;  %v869_v61 = vmov 839922192   ;;  %s244_s21 = scalar_lea.vmem [#allocation7], %s612_s30  ;;  %s1087_s12 = scalar_lea.hbm %s1140_s4, %s627_s14 }
  0x5c   : > { %469 = vperm.xlu1 %709, %v248_v3   ;;  %v483_v62 = vunpack.c.l.s4 %v869_v61  ;;  %s509_s6 = sshll.u32 %s244_s21, 4  ;;  %s493_s24 = scalar_lea.sflag [#allocation4], %s1047_s22  ;;  %s1089_s6 = int_to_ptr.vmem [resolvable:$true] %s509_s6 }
  0x5d   : > { %615 = vmatprep.subr.msk.mxu0 %vm262_vm0, %v257_v5  ;;  %s774_s28 = scalar_lea.vmem %s1089_s6, 128  ;;  %s870_s18 = smov [#allocation7]  }
  0x5e   : > { %616 = vmatpush1.msk.msra.mxu0 %vm262_vm0, %v249_v4  ;;  %708 = vset.pattern.permute.xlu0 %v866_v7  ;;  %v484_v1 = vunpack.c.0.s8 %v483_v62  ;;  %p775_p2 = scmp.ne.s32.totalorder %s1089_s6, %s774_s28  ;;  %s778_s30 = sshll.u32 %s870_s18, 4  ;;  %s779_s30 = int_to_ptr.vmem [resolvable:$false] %s778_s30 }
  0x5f   : > { %617 = vmatmul.mubr.msk.f32.vlgmr.msra.gmra.mrb[0].mxu0 %vm258_vm1, %v250_v6  ;;  %342 = vperm.xlu0 %708, %v248_v3   ;;  %s780_s29 = scalar_lea.vmem %s779_s30, 256  ;;  %p781_p9 = scmp.lt.s32.totalorder %s1089_s6, %s779_s30 }
  0x60   : > { %710 = vset.pattern.permute.xlu1 %v868_v9  ;;  %p776_p6 = pnand %p775_p2, %p997_p13  ;;  %p782_p12 = scmp.lt.s32.totalorder %s780_s29, %s774_s28 }
  0x61   : > { %480 = vperm.xlu1 %710, %v248_v3   ;;  %v486_v3 = vshrl.u32 %v485_v63, 7 }
  0x62   : > { %p777_p8 = pneg %p776_p6  ;;  %p783_p0 = por %p782_p12, %p781_p9 }
  0x63   : > { %711 = vset.pattern.permute.xlu0 %v868_v9  ;;  %v487_v8 = vsub.s32 %v484_v1, %v486_v3 }
  0x64   : > { %p784_p5 = pnand %p783_p0, %p777_p8 }
  0xd9   : > { %v254_v10 = vpop.permute.xlu0 %253 }
  0xdb   : > { %v470_v0 = vpop.permute.xlu1 %469 }
  0xde   : > { %v343_v18 = vpop.permute.xlu0 %342 }
 0x132   : > { %v333_v11 = vpop.f32.mrb[0].mxu0 }
 0x133   : > { %v334_v12 = vadd.f32 %v333_v11, %v254_v10  ;;  %v335_v13 = vpop.f32.mrb[1].mxu0 }
 0x134   : > { %v336_v14 = vadd.f32 %v335_v13, %v254_v10  ;;  %v481_v10 = vpop.permute.xlu1 %480 }
 0x135   : > { %v338_v16 = vmax.f32 %v334_v12, 0.0  ;;  %v488_v13 = vrot.slane %v481_v10, %v487_v8 }
 0x136   : > { %v339_v15 = vmax.f32 %v336_v14, 0.0 }
 0x138   : > { %618 = vmatprep.subr.msk.mxu1 %vm262_vm0, %v339_v15 }
 0x139   : > { %619 = vmatpush1.msk.msra.mxu1 %vm262_vm0, %v338_v16 }
 0x13a   : > { %620 = vmatmul.mubr.msk.f32.vlgmr.msra.gmra.mrb[0].mxu1 %vm258_vm1, %v340_v17 }
 0x20d   : > { %v420_v19 = vpop.f32.mrb[0].mxu1 }
 0x20e   : > { %v421_v20 = vadd.f32 %v420_v19, %v343_v18  ;;  %v422_v21 = vpop.f32.mrb[1].mxu1 }
 0x20f   : > { %v423_v22 = vadd.f32 %v422_v21, %v343_v18 }
 0x210   : > { %v425_v23 = vsel %vm262_vm0, %v421_v20, 0.0 }
 0x211   : > { %v426_v24 = vrot.slane %v425_v23, 4  ;;  %v432_v25 = vsel %vm262_vm0, %v423_v22, 0.0 }
 0x212   : > { %v433_v26 = vrot.slane %v432_v25, 4 }
 0x213   : > { %v427_v27 = vadd.f32 %v426_v24, %v425_v23 }
 0x214   : > { %v434_v28 = vadd.f32 %v433_v26, %v432_v25 }
 0x215   : > { %v428_v29 = vrot.slane %v427_v27, 2 }
 0x216   : > { %v435_v30 = vrot.slane %v434_v28, 2 }
 0x217   : > { %v429_v31 = vadd.f32 %v428_v29, %v427_v27 }
 0x218   : > { %v436_v32 = vadd.f32 %v435_v30, %v434_v28 }
 0x219   : > { %v430_v33 = vrot.slane %v429_v31, 1 }
 0x21a   : > { %v437_v34 = vrot.slane %v436_v32, 1 }
 0x21b   : > { %v431_v35 = vadd.f32 %v430_v33, %v429_v31 }
 0x21c   : > { %v438_v36 = vadd.f32 %v437_v34, %v436_v32 }
 0x21d   : > { %v440_v37 = vmul.f32 0.25, %v431_v35 }
 0x21e   : > { %v441_v38 = vmul.f32 0.25, %v438_v36 }
 0x21f   : > { %v442_v39 = vsub.f32 %v421_v20, %v440_v37 }
 0x220   : > { %v443_v40 = vsub.f32 %v423_v22, %v441_v38 }
 0x221   : > { %v444_v41 = vmul.f32 %v442_v39, %v442_v39 }
 0x222   : > { %v445_v42 = vmul.f32 %v443_v40, %v443_v40 }
 0x223   : > { %v446_v43 = vsel %vm262_vm0, %v444_v41, 0.0 }
 0x224   : > { %v447_v44 = vrot.slane %v446_v43, 4  ;;  %v453_v45 = vsel %vm262_vm0, %v445_v42, 0.0 }
 0x225   : > { %v454_v46 = vrot.slane %v453_v45, 4 }
 0x226   : > { %v448_v47 = vadd.f32 %v447_v44, %v446_v43 }
 0x227   : > { %v455_v48 = vadd.f32 %v454_v46, %v453_v45 }
 0x228   : > { %v449_v49 = vrot.slane %v448_v47, 2 }
 0x229   : > { %v456_v50 = vrot.slane %v455_v48, 2 }
 0x22a   : > { %v450_v51 = vadd.f32 %v449_v49, %v448_v47 }
 0x22b   : > { %v457_v52 = vadd.f32 %v456_v50, %v455_v48 }
 0x22c   : > { %v451_v53 = vrot.slane %v450_v51, 1 }
 0x22d   : > { %v458_v54 = vrot.slane %v457_v52, 1 }
 0x22e   : > { %v452_v55 = vadd.f32 %v451_v53, %v450_v51 }
 0x22f   : > { %v459_v56 = vadd.f32 %v458_v54, %v457_v52 }
 0x230   : > { %v460_v57 = vmul.f32 0.25, %v452_v55 }
 0x231   : > { %v461_v58 = vmul.f32 0.25, %v459_v56 }
 0x232   : > { %v462_v59 = vadd.f32 1e-05, %v460_v57 }
 0x233   : > { %v463_v60 = vadd.f32 1e-05, %v461_v58 }
 0x234   : > { %712 = vrsqrt.f32 %v462_v59 }
 0x235   : > { %714 = vrsqrt.f32 %v463_v60 }
 0x23e   : > { %v713_v4 = vpop.eup %712 }
 0x23f   : > { %v715_v5 = vpop.eup %714  ;;  %v466_v6 = vmul.f32 %v713_v4, %v442_v39 }
 0x240   : > { %v467_v7 = vmul.f32 %v715_v5, %v443_v40 }
 0x241   : > { %v472_v9 = vmul.f32 %v470_v0, %v466_v6 }
 0x242   : > { %v473_v11 = vmul.f32 %v470_v0, %v467_v7 }
 0x244   : > { %v476_v12 = vcombine.low %v472_v9, %v473_v11 }
 0x246   : > { %v478_v14 = vadd.f32 %v476_v12, %v1061_v2 }
 0x248   : > { %v490_v15 = vadd.f32 %v488_v13, %v478_v14 }
 0x24a   : > { %491 = vst [vmem:[%s244_s21] sm:$0xff] %v490_v15 }
 0x24b   : > { %787 = shalt.err (!%p784_p5)
}
 0x24c   : > { %s788_s22 = scalar_lea.hbm %s1087_s12, 128  ;;  %s792_s13 = scalar_lea.hbm %s1140_s4, 256 }
 0x24d   : > { %p789_p10 = scmp.ne.s32.totalorder %s1087_s12, %s788_s22  ;;  %p793_p7 = scmp.lt.u32.totalorder %s1087_s12, %s1140_s4 }
 0x24e   : > { %p794_p3 = scmp.lt.u32.totalorder %s792_s13, %s788_s22  ;;  %p796_p2 = scmp.lt.u32.totalorder %s788_s22, %s1087_s12 }
 0x24f   : > { %p790_p4 = pnand %p789_p10, %p997_p13 }
 0x250   : > { %p795_p11 = por %p794_p3, %p793_p7 }
 0x251   : > { %p791_p1 = pneg %p790_p4 }
 0x252   : > { %p797_p6 = por %p796_p2, %p795_p11 }
 0x254   : > { %p798_p8 = pnand %p797_p6, %p791_p1 }
 0x256   : > { %801 = shalt.err (!%p798_p8)
}
 0x257   : > { %634 = dma.vmem_to_hbm [thread:$0]  (%p997_p13), %s1089_s6, 128, %s1087_s12, %s493_s24  }
 0x258 PF: > { %s521_s14 = sand.u32 1, %s840_s15   ;;  %p1159_p9 = scmp.ne.s32.totalorder %s1148_s26, 0 }
 0x259   : > { %p1160_p12 = scmp.ge.s32.totalorder %s860_s20, 2  ;;  %s522_s21 = scalar_lea.sflag [#allocation4], %s521_s14 }
 0x25b   : > { %p645_p0 = pnand %p1160_p12, %p1159_p9 }
 0x25d   : > { %835 = dma.done.wait (!%p645_p0), %s522_s21, 128  }
 0x25e   : > { %837 = vsyncadd (!%p645_p0), %s522_s21, 4294967168  ;;  %s21_s20 = sadd.s32 1, %s860_s20   ;;  %s1161_s15 = smov %s844_s16 }
 0x25f   : > { %p18_p5 = scmp.ge.s32.totalorder %s21_s20, 4   ;;  %s1162_s16 = smov %s848_s17 }
 0x260   : > { %s1163_s17 = smov %s1005_s10  ;;  %s1164_s18 = smov %s856_s19 }
 0x261   : > { %s1165_s19 = smov %s1167_s5  ;;  %20 = sbr.rel (!%p18_p5) target bundleno = 7 (0x7), region = 85 }
 0x268   :  { %527 = vsyncpa [#allocation3], 1 }
 0x269   :  { %529 = vsyncpa [#allocation3 + $0x1], 1 }
 0x26a   :  { %530 = vsyncpa [#allocation6], 1 }
 0x26b   :  { %531 = vsyncpa [#allocation4], 1 }
 0x26c   :  { %533 = vsyncpa [#allocation4 + $0x1], 1 }

</bundles_post_ra>
